<compile_context>
chip_gen: v5e
topology: v5e:2x2
jax: 0.10.0
libtpu: 0.0.40
codegen_flags: <defaults>
</compile_context>

<pallas_src>
import jax
import jax.numpy as jnp
from jax.experimental import pallas as pl
from jax.experimental.pallas import tpu as pltpu  # noqa: F401  (kept for TODO path below)


def gsage_classifier_kernel(h_ref, a_ref,
                            ws1_ref, wn1_ref, b1_ref,
                            ws2_ref, wn2_ref, b2_ref,
                            pool_ref, wc_ref, bc_ref,
                            out_ref):
    """Whole batch in one step: 2x SAGEConv(mean) + mean readout + linear classifier.

    h_ref    [B*N, Din]   bf16 node features (all graphs flattened)
    a_ref    [B*N, B*N]   bf16 block-diagonal row-normalized adjacency (dst x src)
    pool_ref [B,   B*N]   bf16 per-graph mean-pooling matrix (1/N folded in)
    out_ref  [B,   C]     f32 logits
    """
    h = h_ref[...]
    a = a_ref[...]

    # --- SAGEConv layer 1: relu(h @ Ws1 + (A_hat @ h) @ Wn1 + b1) ------------------
    # Din < H, so aggregate raw features first: the big adjacency dot contracts Din.
    ah = jnp.dot(a, h, preferred_element_type=jnp.float32).astype(jnp.bfloat16)
    self1 = jnp.dot(h, ws1_ref[...], preferred_element_type=jnp.float32)
    neigh1 = jnp.dot(ah, wn1_ref[...], preferred_element_type=jnp.float32)
    h1 = jnp.maximum(self1 + neigh1 + b1_ref[...], 0.0).astype(jnp.bfloat16)

    # --- SAGEConv layer 2: relu(h1 @ Ws2 + A_hat @ (h1 @ Wn2) + b2) ----------------
    # (feat_drop is identity in eval mode)
    p2 = jnp.dot(h1, wn2_ref[...], preferred_element_type=jnp.float32).astype(jnp.bfloat16)
    self2 = jnp.dot(h1, ws2_ref[...], preferred_element_type=jnp.float32)
    neigh2 = jnp.dot(a, p2, preferred_element_type=jnp.float32)
    h2 = jnp.maximum(self2 + neigh2 + b2_ref[...], 0.0).astype(jnp.bfloat16)

    # --- AvgPooling readout + nn.Linear classifier (pool-then-classify) ------------
    hg = jnp.dot(pool_ref[...], h2, preferred_element_type=jnp.float32)       # [B, H]
    out_ref[...] = (jnp.dot(hg.astype(jnp.bfloat16), wc_ref[...],
                            preferred_element_type=jnp.float32)
                    + bc_ref[...])                                            # [B, C]


def classifier_forward(h, adj, params):
    """h: [B, N, in_dim] f32 node features; adj: [B, N, N] dense adjacency (dst x src)."""
    B, N, in_dim = h.shape
    n_classes = params["w_cls"].shape[1]
    bn = B * N

    # DGL mean aggregation: A_hat = A / clamp(in_deg, 1); pre-normalize once.
    deg = jnp.sum(adj, axis=2, keepdims=True)
    a_hat = adj / jnp.maximum(deg, 1.0)

    # Block-diagonal [B*N, B*N] so the whole batch goes through a single kernel step.
    eye_b = jnp.eye(B, dtype=a_hat.dtype)
    a_bd = (a_hat[:, :, None, :] * eye_b[:, None, :, None]).reshape(bn, bn)
    a_bd = a_bd.astype(jnp.bfloat16)

    # Mean-readout pooling matrix with 1/N folded in: hg = pool @ h2.
    pool = (eye_b[:, :, None] * jnp.full((1, 1, N), 1.0 / N, a_hat.dtype)).reshape(B, bn)
    pool = pool.astype(jnp.bfloat16)

    # All matmul operands to bf16 once (f32 accumulation via preferred_element_type).
    h_flat = h.reshape(bn, in_dim).astype(jnp.bfloat16)
    ws1 = params["w_self1"].astype(jnp.bfloat16)
    wn1 = params["w_neigh1"].astype(jnp.bfloat16)
    ws2 = params["w_self2"].astype(jnp.bfloat16)
    wn2 = params["w_neigh2"].astype(jnp.bfloat16)
    wc = params["w_cls"].astype(jnp.bfloat16)

    # Single step, whole arrays resident in VMEM (everything is tiny at these shapes).
    # TODO(synk): for large graphs, tile a_bd over a source-node grid axis ('arbitrary')
    # with vmem_limit_bytes via pltpu.CompilerParams, and on v7x add a 2-way 'parallel'
    # batch split so both TensorCores are used.
    out = pl.pallas_call(
        gsage_classifier_kernel,
        out_shape=jax.ShapeDtypeStruct((B, n_classes), jnp.float32),
    )(h_flat, a_bd, ws1, wn1, params["b1"], ws2, wn2, params["b2"],
      pool, wc, params["b_cls"])
    return out


if __name__ == "__main__":
    key = jax.random.PRNGKey(0)
    B, N, in_dim, hidden_dim, n_classes = 4, 16, 8, 32, 4
    k = jax.random.split(key, 8)

    # deterministic batch of small graphs
    h = jax.random.normal(k[0], (B, N, in_dim), dtype=jnp.float32)
    adj = (jax.random.uniform(k[1], (B, N, N)) < 0.3).astype(jnp.float32)
    adj = jnp.maximum(adj, jnp.eye(N, dtype=jnp.float32)[None])   # add self loops

    # deterministic parameters (SAGEConv fc_self/fc_neigh + classify Linear shapes)
    scale = 0.1
    params = dict(
        w_self1=scale * jax.random.normal(k[2], (in_dim, hidden_dim), dtype=jnp.float32),
        w_neigh1=scale * jax.random.normal(k[3], (in_dim, hidden_dim), dtype=jnp.float32),
        b1=jnp.zeros((1, hidden_dim), jnp.float32),
        w_self2=scale * jax.random.normal(k[4], (hidden_dim, hidden_dim), dtype=jnp.float32),
        w_neigh2=scale * jax.random.normal(k[5], (hidden_dim, hidden_dim), dtype=jnp.float32),
        b2=jnp.zeros((1, hidden_dim), jnp.float32),
        w_cls=scale * jax.random.normal(k[6], (hidden_dim, n_classes), dtype=jnp.float32),
        b_cls=jnp.zeros((1, n_classes), jnp.float32),
    )

    # TODO(synk): 'spp' / 'gap' / 'max' / 'sum' readout variants not implemented; this
    # instance exercises the 'mean' readout + mean-aggregate SAGEConv branch only.
    logits = classifier_forward(h, adj, params)
    jax.block_until_ready(logits)
    assert logits.shape == (B, n_classes)
    print("KERNEL_OK")
</pallas_src>

<mosaic_0001>
module attributes {stable_mosaic.version = 11 : i64} {
  func.func @gsage_classifier_kernel(%arg0: memref<64x8xbf16, #tpu.memory_space<vmem>>, %arg1: memref<64x64xbf16, #tpu.memory_space<vmem>>, %arg2: memref<8x32xbf16, #tpu.memory_space<vmem>>, %arg3: memref<8x32xbf16, #tpu.memory_space<vmem>>, %arg4: memref<1x32xf32, #tpu.memory_space<vmem>>, %arg5: memref<32x32xbf16, #tpu.memory_space<vmem>>, %arg6: memref<32x32xbf16, #tpu.memory_space<vmem>>, %arg7: memref<1x32xf32, #tpu.memory_space<vmem>>, %arg8: memref<4x64xbf16, #tpu.memory_space<vmem>>, %arg9: memref<32x4xbf16, #tpu.memory_space<vmem>>, %arg10: memref<1x4xf32, #tpu.memory_space<vmem>>, %arg11: memref<4x4xf32, #tpu.memory_space<vmem>>) attributes {dimension_semantics = [], scalar_prefetch = 0 : i64, scratch_operands = 0 : i64, tpu.core_type = #tpu.core_type<tc>} {
    %c0 = arith.constant 0 : index
    %c0_0 = arith.constant 0 : index
    %0 = vector.load %arg0[%c0, %c0_0] : memref<64x8xbf16, #tpu.memory_space<vmem>>, vector<64x8xbf16>
    %c0_1 = arith.constant 0 : index
    %c0_2 = arith.constant 0 : index
    %1 = vector.load %arg1[%c0_1, %c0_2] : memref<64x64xbf16, #tpu.memory_space<vmem>>, vector<64x64xbf16>
    %cst = arith.constant dense<0.000000e+00> : vector<64x8xf32>
    %2 = tpu.matmul %1, %0, %cst {dimension_numbers = #tpu.dot_dimension_numbers<[1], [0], [0], [1], [0, 0, 1, 1], [], []>} : vector<64x64xbf16>, vector<64x8xbf16>, vector<64x8xf32> -> vector<64x8xf32>
    %3 = arith.truncf %2 : vector<64x8xf32> to vector<64x8xbf16>
    %c0_3 = arith.constant 0 : index
    %c0_4 = arith.constant 0 : index
    %4 = vector.load %arg2[%c0_3, %c0_4] : memref<8x32xbf16, #tpu.memory_space<vmem>>, vector<8x32xbf16>
    %cst_5 = arith.constant dense<0.000000e+00> : vector<64x32xf32>
    %5 = tpu.matmul %0, %4, %cst_5 {dimension_numbers = #tpu.dot_dimension_numbers<[1], [0], [0], [1], [0, 0, 1, 1], [], []>} : vector<64x8xbf16>, vector<8x32xbf16>, vector<64x32xf32> -> vector<64x32xf32>
    %c0_6 = arith.constant 0 : index
    %c0_7 = arith.constant 0 : index
    %6 = vector.load %arg3[%c0_6, %c0_7] : memref<8x32xbf16, #tpu.memory_space<vmem>>, vector<8x32xbf16>
    %cst_8 = arith.constant dense<0.000000e+00> : vector<64x32xf32>
    %7 = tpu.matmul %3, %6, %cst_8 {dimension_numbers = #tpu.dot_dimension_numbers<[1], [0], [0], [1], [0, 0, 1, 1], [], []>} : vector<64x8xbf16>, vector<8x32xbf16>, vector<64x32xf32> -> vector<64x32xf32>
    %8 = arith.addf %5, %7 : vector<64x32xf32>
    %c0_9 = arith.constant 0 : index
    %c0_10 = arith.constant 0 : index
    %9 = vector.load %arg4[%c0_9, %c0_10] : memref<1x32xf32, #tpu.memory_space<vmem>>, vector<1x32xf32>
    %10 = vector.broadcast %9 : vector<1x32xf32> to vector<64x32xf32>
    %11 = arith.addf %8, %10 : vector<64x32xf32>
    %cst_11 = arith.constant 0.000000e+00 : f32
    %12 = vector.broadcast %cst_11 : f32 to vector<64x32xf32>
    %13 = arith.maximumf %11, %12 : vector<64x32xf32>
    %14 = arith.truncf %13 : vector<64x32xf32> to vector<64x32xbf16>
    %c0_12 = arith.constant 0 : index
    %c0_13 = arith.constant 0 : index
    %15 = vector.load %arg6[%c0_12, %c0_13] : memref<32x32xbf16, #tpu.memory_space<vmem>>, vector<32x32xbf16>
    %cst_14 = arith.constant dense<0.000000e+00> : vector<64x32xf32>
    %16 = tpu.matmul %14, %15, %cst_14 {dimension_numbers = #tpu.dot_dimension_numbers<[1], [0], [0], [1], [0, 0, 1, 1], [], []>} : vector<64x32xbf16>, vector<32x32xbf16>, vector<64x32xf32> -> vector<64x32xf32>
    %17 = arith.truncf %16 : vector<64x32xf32> to vector<64x32xbf16>
    %c0_15 = arith.constant 0 : index
    %c0_16 = arith.constant 0 : index
    %18 = vector.load %arg5[%c0_15, %c0_16] : memref<32x32xbf16, #tpu.memory_space<vmem>>, vector<32x32xbf16>
    %cst_17 = arith.constant dense<0.000000e+00> : vector<64x32xf32>
    %19 = tpu.matmul %14, %18, %cst_17 {dimension_numbers = #tpu.dot_dimension_numbers<[1], [0], [0], [1], [0, 0, 1, 1], [], []>} : vector<64x32xbf16>, vector<32x32xbf16>, vector<64x32xf32> -> vector<64x32xf32>
    %cst_18 = arith.constant dense<0.000000e+00> : vector<64x32xf32>
    %20 = tpu.matmul %1, %17, %cst_18 {dimension_numbers = #tpu.dot_dimension_numbers<[1], [0], [0], [1], [0, 0, 1, 1], [], []>} : vector<64x64xbf16>, vector<64x32xbf16>, vector<64x32xf32> -> vector<64x32xf32>
    %21 = arith.addf %19, %20 : vector<64x32xf32>
    %c0_19 = arith.constant 0 : index
    %c0_20 = arith.constant 0 : index
    %22 = vector.load %arg7[%c0_19, %c0_20] : memref<1x32xf32, #tpu.memory_space<vmem>>, vector<1x32xf32>
    %23 = vector.broadcast %22 : vector<1x32xf32> to vector<64x32xf32>
    %24 = arith.addf %21, %23 : vector<64x32xf32>
    %cst_21 = arith.constant 0.000000e+00 : f32
    %25 = vector.broadcast %cst_21 : f32 to vector<64x32xf32>
    %26 = arith.maximumf %24, %25 : vector<64x32xf32>
    %27 = arith.truncf %26 : vector<64x32xf32> to vector<64x32xbf16>
    %c0_22 = arith.constant 0 : index
    %c0_23 = arith.constant 0 : index
    %28 = vector.load %arg8[%c0_22, %c0_23] : memref<4x64xbf16, #tpu.memory_space<vmem>>, vector<4x64xbf16>
    %cst_24 = arith.constant dense<0.000000e+00> : vector<4x32xf32>
    %29 = tpu.matmul %28, %27, %cst_24 {dimension_numbers = #tpu.dot_dimension_numbers<[1], [0], [0], [1], [0, 0, 1, 1], [], []>} : vector<4x64xbf16>, vector<64x32xbf16>, vector<4x32xf32> -> vector<4x32xf32>
    %30 = arith.truncf %29 : vector<4x32xf32> to vector<4x32xbf16>
    %c0_25 = arith.constant 0 : index
    %c0_26 = arith.constant 0 : index
    %31 = vector.load %arg9[%c0_25, %c0_26] : memref<32x4xbf16, #tpu.memory_space<vmem>>, vector<32x4xbf16>
    %cst_27 = arith.constant dense<0.000000e+00> : vector<4x4xf32>
    %32 = tpu.matmul %30, %31, %cst_27 {dimension_numbers = #tpu.dot_dimension_numbers<[1], [0], [0], [1], [0, 0, 1, 1], [], []>} : vector<4x32xbf16>, vector<32x4xbf16>, vector<4x4xf32> -> vector<4x4xf32>
    %c0_28 = arith.constant 0 : index
    %c0_29 = arith.constant 0 : index
    %33 = vector.load %arg10[%c0_28, %c0_29] : memref<1x4xf32, #tpu.memory_space<vmem>>, vector<1x4xf32>
    %34 = vector.broadcast %33 : vector<1x4xf32> to vector<4x4xf32>
    %35 = arith.addf %32, %34 : vector<4x4xf32>
    %c0_30 = arith.constant 0 : index
    %c0_31 = arith.constant 0 : index
    %36 = vector.load %arg11[%c0_30, %c0_31] : memref<4x4xf32, #tpu.memory_space<vmem>>, vector<4x4xf32>
    tpu.vector_store %arg11[%c0_30, %c0_31], %35 {strides = array<i32>} : memref<4x4xf32, #tpu.memory_space<vmem>>, vector<4x4xf32>,
    return
  }
}

</mosaic_0001>

<bundles_post_ra>
// kernel: tpu_custom_call.1
= control target key start
LH: loop header
LB: loop body
LE: loop exit
PB: predicated region body
PF: predicated region fallthrough
CT: control target
= control target key end

     0   :  { %16 = vsyncpa [#allocation3], 0  ;;  %s916_s0 = inlined_call_operand.vmem [shape: bf16[64,8], index: 0, kind: input, shape index: {}]   ;;  %s917_s1 = inlined_call_operand.vmem [shape: bf16[64,64], index: 1, kind: input, shape index: {}]   ;;  %s918_s2 = inlined_call_operand.hbm [shape: bf16[8,32], index: 2, kind: input, shape index: {}]   ;;  %s919_s3 = inlined_call_operand.hbm [shape: bf16[8,32], index: 3, kind: input, shape index: {}]   ;;  %s920_s4 = inlined_call_operand.vmem [shape: f32[1,32], index: 4, kind: input, shape index: {}]   ;;  %s921_s5 = inlined_call_operand.vmem [shape: bf16[32,32], index: 5, kind: input, shape index: {}]   ;;  %s922_s6 = inlined_call_operand.hbm [shape: bf16[32,32], index: 6, kind: input, shape index: {}]   ;;  %s923_s7 = inlined_call_operand.vmem [shape: f32[1,32], index: 7, kind: input, shape index: {}]   ;;  %s924_s8 = inlined_call_operand.vmem [shape: bf16[4,64], index: 8, kind: input, shape index: {}]   ;;  %s925_s9 = inlined_call_operand.vmem [shape: bf16[32,4], index: 9, kind: input, shape index: {}]   ;;  %s926_s10 = inlined_call_operand.vmem [shape: f32[1,4], index: 10, kind: input, shape index: {}]   ;;  %s927_s11 = inlined_call_operand.hbm [shape: f32[4,4], index: 11, kind: output, shape index: {}]  }
   0x1   :  { %17 = vsyncpa [#allocation6], 0  ;;  %s39_s19 = sshll.u32 %s919_s3, 4  ;;  %s40_s19 = int_to_ptr.hbm [resolvable:$true] %s39_s19 }
   0x2   :  { %18 = vsyncpa [#allocation4], 0  ;;  %s748_s20 = smov [#allocation5]   ;;  %s28_s24 = sshll.u32 %s918_s2, 4  ;;  %s29_s24 = int_to_ptr.hbm [resolvable:$true] %s28_s24 }
   0x3   :  { %s41_s21 = sshll.u32 %s748_s20, 4  ;;  %s749_s25 = smov [#allocation2]   ;;  %s42_s21 = int_to_ptr.vmem [resolvable:$true] %s41_s21 }
   0x4   :  { %44 = dma.hbm_to_vmem [thread:$0]  %s40_s19, 64, %s42_s21, [#allocation6]  }
   0x5   :  { %s30_s26 = sshll.u32 %s749_s25, 4  ;;  %s53_s29 = sshll.u32 %s922_s6, 4  ;;  %s31_s26 = int_to_ptr.vmem [resolvable:$true] %s30_s26  ;;  %s54_s29 = int_to_ptr.hbm [resolvable:$true] %s53_s29 }
   0x6   :  { %33 = dma.hbm_to_vmem [thread:$0]  %s29_s24, 64, %s31_s26, [#allocation3]  }
   0x7   :  { %s750_s3 = smov [#allocation7]   ;;  %s751_s12 = smov 64  }
   0x8   :  { %s55_s30 = sshll.u32 %s750_s3, 4  ;;  %s752_s13 = smov 4   ;;  %s56_s30 = int_to_ptr.vmem [resolvable:$true] %s55_s30 }
   0x9   :  { %61 = dma.hbm_to_vmem [thread:$0]  %s54_s29, 256, %s56_s30, [#allocation6], %s751_s12, %s751_s12, %s752_s13  }
   0xa   :  { %742 = dma.done.wait [#allocation3], 64  }
   0xb   :  { %743 = vsyncadd [#allocation3], 4294967232 }
   0xc   :  { %744 = dma.done.wait [#allocation6], 320  }
   0xd   :  { %745 = vsyncadd [#allocation6], 4294966976  ;;  %v624_v0 = vld [vmem:[%s916_s0 + $0x18] sm:$0xff]  ;;  %v623_v1 = vld [vmem:[%s916_s0 + $0x10] sm:$0xff]  ;;  %vm143_vm0 = vcmask 523264   ;;  %vm204_vm1 = vcmask 1043456  }
   0xe   :  { %160 = vmatpush.bf16.msra.mxu0 %v624_v0  ;;  %v622_v2 = vld [vmem:[%s916_s0 + $0x8] sm:$0xff]  ;;  %v621_v3 = vld [vmem:[%s916_s0] sm:$0xff]  ;;  %v852_v6 = vld [vmem:[%s917_s1 + $0x10] sm:$0xff]  ;;  %vm191_vm2 = vcmask 64512   ;;  %vm321_vm3 = vcmask 261120   ;;  %s753_s17 = smov [#allocation8]  }
   0xf   :  { %v838_v4 = vld [vmem:[%s917_s1] sm:$0xff]  ;;  %v845_v5 = vld [vmem:[%s917_s1 + $0x8] sm:$0xff]  ;;  %v859_v7 = vld [vmem:[%s917_s1 + $0x18] sm:$0xff]  ;;  %s526_s18 = sshll.u32 %s753_s17, 4  ;;  %s528_s20 = sshll.u32 %s927_s11, 4  ;;  %vm519_vm4 = vcmask 27648   ;;  %s527_s18 = int_to_ptr.vmem [resolvable:$true] %s526_s18  ;;  %s529_s20 = int_to_ptr.hbm [resolvable:$true] %s528_s20 }
  0x10   :  { %v189_v8 = vld [vmem:[#allocation2] sm:$0xf]  ;;  %v190_v10 = vld [vmem:[#allocation5] sm:$0xf]  ;;  %v630_v24 = vld [vmem:[#allocation7 + $0x8] sm:$0xff] }
  0x11   :  { %v250_v9 = vsel %vm204_vm1, %v189_v8, 0  ;;  %v206_v11 = vsel %vm204_vm1, %v190_v10, 0  ;;  %v632_v25 = vld [vmem:[%s921_s5 + $0x8] sm:$0xff]  ;;  %v631_v27 = vld [vmem:[%s921_s5] sm:$0xff] }
  0x12   :  { %161 = vmatpush.bf16.msra.mxu0 %v623_v1  ;;  %636 = vmatpush.bf16.msra.mxu2 %v250_v9  ;;  %v629_v26 = vld [vmem:[#allocation7] sm:$0xff]  ;;  %v643_v31 = vld [vmem:[%s920_s4] ss:$0 sm:$0xff] }
  0x13   :  { %215 = vmatpush.bf16.msra.mxu1 %v206_v11  ;;  %635 = vmatpush.bf16.msra.mxu3 %v206_v11 }
  0x15   :  { %580 = vmatmul.msk.bf16.vlgmr.msra.gmra.mxu2 %vm191_vm2, %v622_v2 }
  0x16   :  { %162 = vmatpush.bf16.msra.mxu0 %v622_v2  ;;  %418 = vmatpush.bf16.msrb.mxu2 %v632_v25 }
  0x17   :  { %340 = vmatpush.bf16.msrb.mxu3 %v630_v24 }
  0x1a   :  { %163 = vmatpush.bf16.msra.mxu0 %v621_v3  ;;  %419 = vmatpush.bf16.msrb.mxu2 %v631_v27 }
  0x1b   :  { %341 = vmatpush.bf16.msrb.mxu3 %v629_v26 }
  0x1d   :  { %571 = vmatmul.msk.bf16.vlgmr.msra.gmra.mxu0 %vm143_vm0, %v838_v4 }
  0x1e   :  { %259 = vmatpush.bf16.msrb.mxu0 %v250_v9 }
  0x25   :  { %581 = vmatmul.msk.bf16.gmra.mxu2 %vm191_vm2, %v623_v1 }
  0x2d   :  { %572 = vmatmul.msk.bf16.gmra.mxu0 %vm143_vm0, %v845_v5 }
  0x35   :  { %582 = vmatmul.msk.bf16.gmra.mxu2 %vm191_vm2, %v624_v0 }
  0x3d   :  { %573 = vmatmul.msk.bf16.gmra.mxu0 %vm143_vm0, %v852_v6 }
  0x4d   :  { %574 = vmatmul.msk.bf16.gmra.mxu0 %vm143_vm0, %v859_v7 }
  0x5d   :  { %579 = vmatmul.msk.bf16.vlgmr.msrb.gmra.mxu0 %vm191_vm2, %v621_v3 }
  0x98   :  { %v266_v36 = vpop.f32.mrf.mxu2 }
  0x9a   :  { %v165_v12 = vpop.f32.mrf.mxu0 }
  0xa0   :  { %v268_v42 = vpop.f32.mrf.mxu2 }
  0xa2   :  { %v167_v13 = vpop.f32.mrf.mxu0 }
  0xa3   :  { %v185_v14 = vpack.c.bf16 %v167_v13, %v165_v12 }
  0xa5   :  { %575 = vmatmul.msk.bf16.vlgmr.msra.gmra.mxu1 %vm191_vm2, %v185_v14 }
  0xa8   :  { %v271_v50 = vpop.f32.mrf.mxu2 }
  0xaa   :  { %v170_v15 = vpop.f32.mrf.mxu0 }
  0xb0   :  { %v273_v54 = vpop.f32.mrf.mxu2 }
  0xb2   :  { %v172_v16 = vpop.f32.mrf.mxu0 }
  0xb3   :  { %v186_v17 = vpack.c.bf16 %v172_v16, %v170_v15 }
  0xb5   :  { %576 = vmatmul.msk.bf16.gmra.mxu1 %vm191_vm2, %v186_v17 }
  0xb8   :  { %v276_v62 = vpop.f32.mrf.mxu2 }
  0xba   :  { %v175_v18 = vpop.f32.mrf.mxu0 }
  0xc0   :  { %v278_v1 = vpop.f32.mrf.mxu2 }
  0xc2   :  { %v177_v19 = vpop.f32.mrf.mxu0 }
  0xc3   :  { %v187_v20 = vpack.c.bf16 %v177_v19, %v175_v18 }
  0xc5   :  { %577 = vmatmul.msk.bf16.gmra.mxu1 %vm191_vm2, %v187_v20 }
  0xca   :  { %v180_v21 = vpop.f32.mrf.mxu0 }
  0xd2   :  { %v182_v22 = vpop.f32.mrf.mxu0 }
  0xd3   :  { %v188_v23 = vpack.c.bf16 %v182_v22, %v180_v21 }
  0xd5   :  { %578 = vmatmul.msk.bf16.vlgmr.msra.gmra.mxu3 %vm191_vm2, %v188_v23 }
  0xda   :  { %v261_v28 = vpop.f32.mrf.mxu0 }
  0xe2   :  { %v263_v32 = vpop.f32.mrf.mxu0 }
 0x122   :  { %v217_v29 = vpop.f32.mrf.mxu1 }
 0x123   :  { %v262_v30 = vadd.f32 %v261_v28, %v217_v29 }
 0x125   :  { %v285_v34 = vadd.f32 %v643_v31, %v262_v30 }
 0x127   :  { %v293_v38 = vmax.f32 %v285_v34, 0.0 }
 0x12a   :  { %v219_v33 = vpop.f32.mrf.mxu1 }
 0x12b   :  { %v264_v35 = vadd.f32 %v263_v32, %v219_v33 }
 0x12d   :  { %v286_v37 = vadd.f32 %v643_v31, %v264_v35 }
 0x12f   :  { %v294_v39 = vmax.f32 %v286_v37, 0.0 }
 0x131   :  { %v301_v40 = vpack.c.bf16 %v294_v39, %v293_v38  ;;  %v644_v38 = vld [vmem:[%s923_s7] ss:$0 sm:$0xff] }
 0x132   :  { %v222_v41 = vpop.f32.mrf.mxu1 }
 0x133   :  { %591 = vmatmul.msk.bf16.vlgmr.msrb.gmra.mxu3 %vm321_vm3, %v301_v40  ;;  %607 = vmatmul.msk.bf16.vlgmr.msrb.gmra.mxu2 %vm321_vm3, %v301_v40  ;;  %v267_v43 = vadd.f32 %v266_v36, %v222_v41 }
 0x135   :  { %v287_v45 = vadd.f32 %v643_v31, %v267_v43 }
 0x137   :  { %v295_v48 = vmax.f32 %v287_v45, 0.0 }
 0x13a   :  { %v224_v44 = vpop.f32.mrf.mxu1 }
 0x13b   :  { %v269_v46 = vadd.f32 %v268_v42, %v224_v44 }
 0x13d   :  { %v288_v47 = vadd.f32 %v643_v31, %v269_v46 }
 0x13f   :  { %v296_v49 = vmax.f32 %v288_v47, 0.0 }
 0x141   :  { %v302_v51 = vpack.c.bf16 %v296_v49, %v295_v48 }
 0x142   :  { %v227_v52 = vpop.f32.mrf.mxu1 }
 0x143   :  { %592 = vmatmul.msk.bf16.gmra.mxu3 %vm321_vm3, %v302_v51  ;;  %608 = vmatmul.msk.bf16.gmra.mxu2 %vm321_vm3, %v302_v51  ;;  %v272_v53 = vadd.f32 %v271_v50, %v227_v52 }
 0x145   :  { %v289_v56 = vadd.f32 %v643_v31, %v272_v53 }
 0x147   :  { %v297_v59 = vmax.f32 %v289_v56, 0.0 }
 0x14a   :  { %v229_v55 = vpop.f32.mrf.mxu1 }
 0x14b   :  { %v274_v57 = vadd.f32 %v273_v54, %v229_v55 }
 0x14d   :  { %v290_v58 = vadd.f32 %v643_v31, %v274_v57 }
 0x14f   :  { %v298_v60 = vmax.f32 %v290_v58, 0.0 }
 0x151   :  { %v303_v61 = vpack.c.bf16 %v298_v60, %v297_v59 }
 0x153   :  { %593 = vmatmul.msk.bf16.gmra.mxu3 %vm321_vm3, %v303_v61  ;;  %609 = vmatmul.msk.bf16.gmra.mxu2 %vm321_vm3, %v303_v61 }
 0x158   :  { %v232_v63 = vpop.f32.mrf.mxu3 }
 0x159   :  { %v277_v0 = vadd.f32 %v276_v62, %v232_v63 }
 0x15b   :  { %v291_v3 = vadd.f32 %v643_v31, %v277_v0 }
 0x15d   :  { %v299_v10 = vmax.f32 %v291_v3, 0.0  ;;  %v465_v3 = vld [vmem:[%s924_s8] sm:$0x3] }
 0x160   :  { %v234_v2 = vpop.f32.mrf.mxu3 }
 0x161   :  { %v279_v8 = vadd.f32 %v278_v1, %v234_v2 }
 0x163   :  { %v292_v9 = vadd.f32 %v643_v31, %v279_v8  ;;  %v633_v8 = vld [vmem:[%s925_s9] sm:$0xff] }
 0x165   :  { %v300_v11 = vmax.f32 %v292_v9, 0.0 }
 0x167   :  { %v304_v12 = vpack.c.bf16 %v300_v11, %v299_v10 }
 0x169   :  { %594 = vmatmul.msk.bf16.gmra.mxu3 %vm321_vm3, %v304_v12  ;;  %610 = vmatmul.msk.bf16.gmra.mxu2 %vm321_vm3, %v304_v12  ;;  %v645_v12 = vld [vmem:[%s926_s10] ss:$0 sm:$0xff] }
 0x1b6   :  { %v343_v13 = vpop.f32.mrf.mxu3  ;;  %v421_v25 = vpop.f32.mrf.mxu2 }
 0x1be   :  { %v345_v14 = vpop.f32.mrf.mxu3  ;;  %v423_v26 = vpop.f32.mrf.mxu2 }
 0x1bf   :  { %v363_v24 = vpack.c.bf16 %v345_v14, %v343_v13 }
 0x1c6   :  { %v348_v15 = vpop.f32.mrf.mxu3  ;;  %v426_v29 = vpop.f32.mrf.mxu2 }
 0x1ce   :  { %v350_v16 = vpop.f32.mrf.mxu3  ;;  %v428_v32 = vpop.f32.mrf.mxu2 }
 0x1cf   :  { %v364_v23 = vpack.c.bf16 %v350_v16, %v348_v15 }
 0x1d6   :  { %v353_v17 = vpop.f32.mrf.mxu3  ;;  %v431_v34 = vpop.f32.mrf.mxu2 }
 0x1de   :  { %v355_v18 = vpop.f32.mrf.mxu3  ;;  %v433_v35 = vpop.f32.mrf.mxu2 }
 0x1df   :  { %v365_v22 = vpack.c.bf16 %v355_v18, %v353_v17 }
 0x1ec   :  { %v358_v19 = vpop.f32.mrf.mxu3 }
 0x1f4   :  { %v360_v20 = vpop.f32.mrf.mxu3 }
 0x1f5   :  { %v366_v21 = vpack.c.bf16 %v360_v20, %v358_v19 }
 0x1f7   :  { %375 = vmatpush.bf16.msrb.mxu1 %v366_v21 }
 0x1fb   :  { %376 = vmatpush.bf16.msrb.mxu1 %v365_v22 }
 0x1ff   :  { %377 = vmatpush.bf16.msrb.mxu1 %v364_v23 }
 0x203   :  { %378 = vmatpush.bf16.msrb.mxu1 %v363_v24 }
 0x206   :  { %595 = vmatmul.msk.bf16.vlgmr.msrb.gmra.mxu1 %vm143_vm0, %v838_v4 }
 0x216   :  { %596 = vmatmul.msk.bf16.gmra.mxu1 %vm143_vm0, %v845_v5  ;;  %v436_v5 = vpop.f32.mrf.mxu2 }
 0x21e   :  { %v438_v40 = vpop.f32.mrf.mxu2 }
 0x226   :  { %597 = vmatmul.msk.bf16.gmra.mxu1 %vm143_vm0, %v852_v6  ;;  %v634_v6 = vld [vmem:[%s925_s9 + $0x8] sm:$0xff] }
 0x227   :  { %512 = vmatpush.bf16.msra.mxu0 %v634_v6 }
 0x22b   :  { %513 = vmatpush.bf16.msra.mxu0 %v633_v8 }
 0x236   :  { %598 = vmatmul.msk.bf16.gmra.mxu1 %vm143_vm0, %v859_v7 }
 0x283   :  { %v380_v27 = vpop.f32.mrf.mxu1 }
 0x284   :  { %v422_v28 = vadd.f32 %v421_v25, %v380_v27 }
 0x286   :  { %v445_v61 = vadd.f32 %v644_v38, %v422_v28 }
 0x288   :  { %v453_v1 = vmax.f32 %v445_v61, 0.0 }
 0x28b   :  { %v382_v30 = vpop.f32.mrf.mxu1 }
 0x28c   :  { %v424_v52 = vadd.f32 %v423_v26, %v382_v30 }
 0x28e   :  { %v446_v58 = vadd.f32 %v644_v38, %v424_v52 }
 0x290   :  { %v454_v63 = vmax.f32 %v446_v58, 0.0 }
 0x292   :  { %v461_v2 = vpack.c.bf16 %v454_v63, %v453_v1 }
 0x293   :  { %v385_v31 = vpop.f32.mrf.mxu1 }
 0x294   :  { %v427_v48 = vadd.f32 %v426_v29, %v385_v31 }
 0x296   :  { %v447_v56 = vadd.f32 %v644_v38, %v427_v48 }
 0x298   :  { %v455_v62 = vmax.f32 %v447_v56, 0.0 }
 0x29b   :  { %v387_v33 = vpop.f32.mrf.mxu1 }
 0x29c   :  { %v429_v45 = vadd.f32 %v428_v32, %v387_v33 }
 0x29e   :  { %v448_v53 = vadd.f32 %v644_v38, %v429_v45 }
 0x2a0   :  { %v456_v59 = vmax.f32 %v448_v53, 0.0 }
 0x2a2   :  { %v462_v0 = vpack.c.bf16 %v456_v59, %v455_v62 }
 0x2a3   :  { %v390_v4 = vpop.f32.mrf.mxu1 }
 0x2a4   :  { %v432_v42 = vadd.f32 %v431_v34, %v390_v4 }
 0x2a6   :  { %v449_v49 = vadd.f32 %v644_v38, %v432_v42 }
 0x2a8   :  { %v457_v57 = vmax.f32 %v449_v49, 0.0 }
 0x2ab   :  { %v392_v36 = vpop.f32.mrf.mxu1 }
 0x2ac   :  { %v434_v39 = vadd.f32 %v433_v35, %v392_v36 }
 0x2ae   :  { %v450_v46 = vadd.f32 %v644_v38, %v434_v39 }
 0x2b0   :  { %v458_v54 = vmax.f32 %v450_v46, 0.0 }
 0x2b2   :  { %v463_v60 = vpack.c.bf16 %v458_v54, %v457_v57 }
 0x2b3   :  { %v395_v37 = vpop.f32.mrf.mxu1 }
 0x2b4   :  { %v437_v7 = vadd.f32 %v436_v5, %v395_v37 }
 0x2b6   :  { %v451_v43 = vadd.f32 %v644_v38, %v437_v7 }
 0x2b8   :  { %v459_v50 = vmax.f32 %v451_v43, 0.0 }
 0x2bb   :  { %v397_v41 = vpop.f32.mrf.mxu1 }
 0x2bc   :  { %v439_v44 = vadd.f32 %v438_v40, %v397_v41 }
 0x2be   :  { %v452_v47 = vadd.f32 %v644_v38, %v439_v44 }
 0x2c0   :  { %v460_v51 = vmax.f32 %v452_v47, 0.0 }
 0x2c2   :  { %v464_v55 = vpack.c.bf16 %v460_v51, %v459_v50 }
 0x2c4   :  { %473 = vmatpush.bf16.msra.mxu3 %v464_v55 }
 0x2c8   :  { %474 = vmatpush.bf16.msra.mxu3 %v463_v60 }
 0x2cc   :  { %475 = vmatpush.bf16.msra.mxu3 %v462_v0 }
 0x2d0   :  { %476 = vmatpush.bf16.msra.mxu3 %v461_v2 }
 0x2d3   :  { %611 = vmatmul.msk.bf16.vlgmr.msra.gmra.mxu3 %vm143_vm0, %v465_v3 }
 0x356   :  { %v478_v9 = vpop.f32.mrf.mxu3 }
 0x357   :  { %v482_v10 = vpack.c.bf16 %v478_v9, %v478_v9 }
 0x359   :  { %620 = vmatmul.msk.bf16.vlgmr.msra.gmra.mxu0 %vm321_vm3, %v482_v10 }
 0x35e   :  { %v480_v11 = vpop.f32.mrf.mxu3 }
 0x3d6   :  { %v515_v13 = vpop.f32.mrf.mxu0 }
 0x3d7   :  { %v516_v14 = vadd.f32 %v645_v12, %v515_v13 }
 0x3d9   :  { %520 = vst.msk [vmem:[#allocation8] sm:$0xf] %vm519_vm4, %v516_v14 }
 0x3da   :  { %531 = dma.vmem_to_hbm [thread:$0]  %s527_s18, 64, %s529_s20, [#allocation4]  }
 0x3de   :  { %v517_v15 = vpop.f32.mrf.mxu0 }
 0x3df   :  { %746 = dma.done.wait [#allocation4], 64  }
 0x3e0   :  { %747 = vsyncadd [#allocation4], 4294967232 }
 0x3e1   :  { %536 = vsyncpa [#allocation3], 1 }
 0x3e2   :  { %537 = vsyncpa [#allocation6], 1 }
 0x3e3   :  { %538 = vsyncpa [#allocation4], 1 }

</bundles_post_ra>
